<compile_context>
chip_gen: v6e
topology: v6e:2x2x1
jax: 0.10.0
libtpu: 0.0.40
codegen_flags: <defaults>
</compile_context>

<pallas_src>
import functools

import jax
import jax.numpy as jnp
from jax.experimental import pallas as pl
from jax.experimental.pallas import tpu as pltpu

_VMEM_LIMIT = 48 * 1024 * 1024   # < 64 MiB physical VMEM on v7x, >> default scoped limits
_TIME_CHUNK = 16                 # GRU steps per grid iteration
_LANE = 128
_SUBLANE = 8


def _round_up(x, m):
    return ((x + m - 1) // m) * m


def _cdiv(a, b):
    return -(-a // b)


def _row_tiling(n, max_tile=512):
    """Row tile + padded row count (pad N up instead of full-slab fallback)."""
    if n <= max_tile:
        return n, n
    return max_tile, _round_up(n, max_tile)


# ----------------------------------------------------------------------------
# Pallas kernels
# ----------------------------------------------------------------------------
def proj_kernel(x_ref, w_ref, b_ref, o_ref):
    """xg = x @ W_ih + b_ih for BOTH directions at once: (rows, E) @ (E, 6Hp)."""
    x = x_ref[...].astype(jnp.bfloat16)
    y = jnp.dot(x, w_ref[...], preferred_element_type=jnp.float32) + b_ref[...]
    o_ref[...] = y.astype(o_ref.dtype)     # bf16 xg: halves serial-path HBM traffic


def bigru_chunk_kernel(xg_ref, whh_ref, bhh_ref, out_ref, h_ref, *, hp):
    """Tt GRU steps of one direction (PyTorch gate order r, z, n).

    grid = (direction, chunk).  xg already holds x@W_ih + b_ih for all three
    gates, so only the fused (Bp,Hp)x(Hp,3Hp) hidden matmul runs per step.
    The backward direction receives time-reversed chunks via the index_map and
    walks each chunk back-to-front (t = Tt-1-i).
    """
    d = pl.program_id(0)          # 0 = forward, 1 = backward
    c = pl.program_id(1)          # chunk index along this direction's walk

    @pl.when(c == 0)
    def _():
        h_ref[...] = jnp.zeros_like(h_ref)     # h0 is zeros in the module

    whh = whh_ref[0]              # (Hp, 3Hp) bf16, resident across the chunk loop
    bhh = bhh_ref[0]              # (1, 3Hp) f32
    tt = xg_ref.shape[0]

    def step(i, carry):
        t = i + d * (tt - 1 - 2 * i)               # fwd: i ; bwd: tt-1-i
        xg = xg_ref[t].astype(jnp.float32)         # (Bp, 3Hp)
        h = h_ref[...]                             # (Bp, Hp) f32
        hg = jnp.dot(h.astype(jnp.bfloat16), whh,
                     preferred_element_type=jnp.float32) + bhh
        r = jax.nn.sigmoid(xg[:, :hp] + hg[:, :hp])
        z = jax.nn.sigmoid(xg[:, hp:2 * hp] + hg[:, hp:2 * hp])
        n = jnp.tanh(xg[:, 2 * hp:] + r * hg[:, 2 * hp:])
        h_new = (1.0 - z) * n + z * h
        h_ref[...] = h_new
        out_ref[t] = h_new                         # lane-dense (Bp, Hp) store
        return carry

    jax.lax.fori_loop(0, tt, step, 0, unroll=True)


def linear_kernel(x_ref, w_ref, b_ref, o_ref, *, normalize):
    """y = x @ W + b, optionally l2-normalised over the last dim."""
    x = x_ref[...].astype(jnp.bfloat16)
    y = jnp.dot(x, w_ref[...], preferred_element_type=jnp.float32) + b_ref[...]
    if normalize:
        # TODO(synk): external l2norm() is not shown in model_cap.py; assumed
        # x * rsqrt(sum(x^2) + eps) along the feature (last) dimension.
        y = y * jax.lax.rsqrt(jnp.sum(y * y, axis=-1, keepdims=True) + 1e-12)
    o_ref[...] = y


def mlp2_kernel(x_ref, w1_ref, b1_ref, w2_ref, b2_ref, o_ref):
    """Fused cat_linear -> sen2vec_linear -> l2norm head (tiny row count)."""
    x = x_ref[...].astype(jnp.bfloat16)
    y = jnp.dot(x, w1_ref[...], preferred_element_type=jnp.float32) + b1_ref[...]
    y = jnp.dot(y.astype(jnp.bfloat16), w2_ref[...],
                preferred_element_type=jnp.float32) + b2_ref[...]
    y = y * jax.lax.rsqrt(jnp.sum(y * y, axis=-1, keepdims=True) + 1e-12)
    o_ref[...] = y


# ----------------------------------------------------------------------------
# Wrappers
# ----------------------------------------------------------------------------
def input_projection(x2d, wih, bih):
    """xg = x2d @ W_ih + b_ih for both directions fused: output (N, 6Hp) bf16."""
    n, e = x2d.shape
    g = wih.shape[1]
    tile, n_pad = _row_tiling(n)
    if n_pad != n:
        x2d = jnp.pad(x2d, ((0, n_pad - n), (0, 0)))
    out = pl.pallas_call(
        proj_kernel,
        out_shape=jax.ShapeDtypeStruct((n_pad, g), jnp.bfloat16),
        grid=(n_pad // tile,),
        in_specs=[
            pl.BlockSpec((tile, e), lambda i: (i, 0)),
            pl.BlockSpec((e, g), lambda i: (0, 0)),
            pl.BlockSpec((1, g), lambda i: (0, 0)),
        ],
        out_specs=pl.BlockSpec((tile, g), lambda i: (i, 0)),
        compiler_params=pltpu.CompilerParams(
            dimension_semantics=("parallel",), vmem_limit_bytes=_VMEM_LIMIT),
    )(x2d, wih, bih)
    return out[:n] if n_pad != n else out


def run_bigru_recurrence(xg, whh, bhh, time_chunk):
    """Fused bidirectional GRU recurrence over time-major, time-chunked gates.

    xg:  (Sp, Bp, 6Hp) bf16 — columns [dir0 r|z|n, dir1 r|z|n]
    whh: (2, Hp, 3Hp) bf16, bhh: (2, 1, 3Hp) f32
    returns (Sp, Bp, 2Hp) f32 time-major — columns [dir0 h, dir1 h].
    """
    sp, bp, _ = xg.shape
    hp = whh.shape[1]
    tt = time_chunk
    n_chunks = sp // tt

    def cmap(d, c):
        # forward (d=0): chunk c ; backward (d=1): chunk n_chunks-1-c
        return c + d * (n_chunks - 1 - 2 * c)

    return pl.pallas_call(
        functools.partial(bigru_chunk_kernel, hp=hp),
        out_shape=jax.ShapeDtypeStruct((sp, bp, 2 * hp), jnp.float32),
        grid_spec=pltpu.PrefetchScalarGridSpec(
            num_scalar_prefetch=0,
            grid=(2, n_chunks),
            in_specs=[
                pl.BlockSpec((tt, bp, 3 * hp), lambda d, c: (cmap(d, c), 0, d)),
                pl.BlockSpec((1, hp, 3 * hp), lambda d, c: (d, 0, 0)),
                pl.BlockSpec((1, 1, 3 * hp), lambda d, c: (d, 0, 0)),
            ],
            out_specs=pl.BlockSpec((tt, bp, hp), lambda d, c: (cmap(d, c), 0, d)),
            scratch_shapes=[pltpu.VMEM((bp, hp), jnp.float32)],
        ),
        # TODO(synk): v7x — CORE_PARALLEL on the direction axis (per-core scratch)
        # and pipeline_mode=pl.Buffered(1) on the resident whh/bhh specs.
        compiler_params=pltpu.CompilerParams(
            dimension_semantics=("arbitrary", "arbitrary"),
            vmem_limit_bytes=_VMEM_LIMIT),
    )(xg, whh, bhh)


def bigru(x_tm, p, hidden, time_chunk=_TIME_CHUNK):
    """nn.GRU(batch_first=True, bidirectional=True, num_layers=1), zero h0.

    x_tm: time-major embedded input (S, B, E).
    Returns (seq_tm (S, B, 2H) time-major, h_n (2, B, H) [fwd, bwd]).
    """
    s, b, e = x_tm.shape
    hp = p["whh"].shape[1]
    h = hidden
    tt = min(time_chunk, s)
    sp = _cdiv(s, tt) * tt
    bp = max(_SUBLANE, _round_up(b, _SUBLANE))

    x_pad = jnp.pad(x_tm, ((0, sp - s), (0, bp - b), (0, 0)))
    xg = input_projection(x_pad.reshape(sp * bp, e), p["wih"], p["bih"])
    xg = xg.reshape(sp, bp, 6 * hp)

    if sp > s:
        # Identity GRU steps for padded time: push the z-gate pre-activation to
        # +inf so h_new == h; the backward direction then crosses the padded
        # tail without disturbing its state before reaching real tokens.
        pad = jnp.zeros((sp - s, bp, 6 * hp), xg.dtype)
        pad = pad.at[:, :, hp:2 * hp].set(30000.0)         # dir-0 z gate
        pad = pad.at[:, :, 4 * hp:5 * hp].set(30000.0)     # dir-1 z gate
        xg = jnp.concatenate([xg[:s], pad], axis=0)

    out = run_bigru_recurrence(xg, p["whh"], p["bhh"], tt)   # (sp, bp, 2hp)

    seq_tm = jnp.concatenate([out[:s, :b, :h], out[:s, :b, hp:hp + h]], axis=-1)
    h_n = jnp.stack([out[s - 1, :b, :h], out[0, :b, hp:hp + h]], axis=0)
    return seq_tm, h_n


def linear(x2d, w_t, b, *, normalize):
    n, din = x2d.shape
    dout = w_t.shape[1]
    tile, n_pad = _row_tiling(n)
    x_in = jnp.pad(x2d, ((0, n_pad - n), (0, 0))) if n_pad != n else x2d
    out = pl.pallas_call(
        functools.partial(linear_kernel, normalize=normalize),
        out_shape=jax.ShapeDtypeStruct((n_pad, dout), jnp.float32),
        grid=(n_pad // tile,),
        in_specs=[
            pl.BlockSpec((tile, din), lambda i: (i, 0)),
            pl.BlockSpec((din, dout), lambda i: (0, 0)),
            pl.BlockSpec((1, dout), lambda i: (0, 0)),
        ],
        out_specs=pl.BlockSpec((tile, dout), lambda i: (i, 0)),
        compiler_params=pltpu.CompilerParams(
            dimension_semantics=("parallel",), vmem_limit_bytes=_VMEM_LIMIT),
    )(x_in, w_t, b)
    return out[:n] if n_pad != n else out


def sen2vec_head(x2d, w1, b1, w2, b2):
    """Fused cat_linear -> sen2vec_linear -> l2norm on a handful of rows."""
    n = x2d.shape[0]
    c = w2.shape[1]
    return pl.pallas_call(
        mlp2_kernel,
        out_shape=jax.ShapeDtypeStruct((n, c), jnp.float32),
        grid=(1,),
        in_specs=[
            pl.BlockSpec(x2d.shape, lambda i: (0, 0)),
            pl.BlockSpec(w1.shape, lambda i: (0, 0)),
            pl.BlockSpec(b1.shape, lambda i: (0, 0)),
            pl.BlockSpec(w2.shape, lambda i: (0, 0)),
            pl.BlockSpec(b2.shape, lambda i: (0, 0)),
        ],
        out_specs=pl.BlockSpec((n, c), lambda i: (0, 0)),
        compiler_params=pltpu.CompilerParams(
            dimension_semantics=("arbitrary",), vmem_limit_bytes=_VMEM_LIMIT),
    )(x2d, w1, b1, w2, b2)


# ----------------------------------------------------------------------------
# Parameters (deterministic synthetic init; shapes from GRU.__init__)
# GRU weights are stored pre-fused / pre-transposed, padded to Hp = 128*k:
#   wih: (E, 6Hp) bf16 cols [d0 r|z|n, d1 r|z|n]   whh: (2, Hp, 3Hp) bf16
#   padded gate columns / hidden rows are zero, so padded h stays exactly 0.
# Linear W stored transposed (Din, Dout) bf16, biases f32.
# ----------------------------------------------------------------------------
def init_params(key, vocab_size, emb_dim, hidden, common_size):
    h = hidden
    hp = _round_up(h, _LANE)
    keys = iter(jax.random.split(key, 32))
    k = 1.0 / (h ** 0.5)

    def uni(shape, scale):
        return jax.random.uniform(next(keys), shape, jnp.float32, -scale, scale)

    def gru_params():
        wih = uni((2, emb_dim, 3, h), k)          # (dir, E, gate, H)
        whh = uni((2, h, 3, h), k)
        bih = uni((2, 3, h), k)
        bhh = uni((2, 3, h), k)
        padh = hp - h
        wih = jnp.pad(wih, ((0, 0), (0, 0), (0, 0), (0, padh)))
        whh = jnp.pad(whh, ((0, 0), (0, padh), (0, 0), (0, padh)))
        bih = jnp.pad(bih, ((0, 0), (0, 0), (0, padh)))
        bhh = jnp.pad(bhh, ((0, 0), (0, 0), (0, padh)))
        return {
            "wih": jnp.concatenate(
                [wih[0].reshape(emb_dim, 3 * hp),
                 wih[1].reshape(emb_dim, 3 * hp)], axis=-1).astype(jnp.bfloat16),
            "bih": bih.reshape(1, 6 * hp),                         # f32
            "whh": whh.reshape(2, hp, 3 * hp).astype(jnp.bfloat16),
            "bhh": bhh.reshape(2, 1, 3 * hp),                      # f32
        }

    def xavier_t(din, dout):                      # stored transposed: (in, out)
        lim = (6.0 / (din + dout)) ** 0.5
        return uni((din, dout), lim).astype(jnp.bfloat16)

    def lin_b(din, dout):
        return uni((1, dout), 1.0 / (din ** 0.5))

    return {
        "embedding": jax.random.normal(next(keys), (vocab_size, emb_dim),
                                       jnp.float32),
        "sen_gru": gru_params(),
        "verb_gru": gru_params(),
        # bidirectional=True widths
        "cat_w": xavier_t(4 * h, 2 * h), "cat_b": lin_b(4 * h, 2 * h),
        "s2v_w": xavier_t(2 * h, common_size), "s2v_b": lin_b(2 * h, common_size),
        "sh_w": xavier_t(2 * h, h), "sh_b": lin_b(2 * h, h),
        "so_w": xavier_t(2 * h, 2 * h), "so_b": lin_b(2 * h, 2 * h),
    }


# ----------------------------------------------------------------------------
# Forward pass (mirrors GRU.forward with self_attention == False)
# ----------------------------------------------------------------------------
def gru_module_forward(params, batch_sentence, batch_verb, padidx, hidden):
    b = batch_sentence.shape[0]
    emb = params["embedding"]

    words_num = jnp.sum(batch_sentence != padidx, axis=1)
    verbs_num = jnp.sum(batch_verb != padidx, axis=1)

    # Time-major embedding gather: only the tiny int32 index matrix is
    # transposed, never the (B, S, E) activation tensor.
    sen_embed_tm = emb[batch_sentence.T]        # (S, B, E)
    verb_embed_tm = emb[batch_verb.T]           # (Sv, B, E)

    sen_seq_tm, sen_h_n = bigru(sen_embed_tm, params["sen_gru"], hidden)
    verb_seq_tm, verb_h_n = bigru(verb_embed_tm, params["verb_gru"], hidden)

    batch_idx = jnp.arange(b)
    # NOTE: an all-pad row gives index -1 (wraps to the last step), matching the
    # previous implementation; demo inputs contain no all-pad rows.
    sen2vec = sen_seq_tm[words_num - 1, batch_idx]       # (B, 2H) last real step
    verb2vec = verb_seq_tm[verbs_num - 1, batch_idx]
    cat = jnp.concatenate([sen2vec, verb2vec], axis=1)               # (B, 4H)
    sen2vec = sen2vec_head(cat, params["cat_w"], params["cat_b"],
                           params["s2v_w"], params["s2v_b"])         # (B, C)
    # sen2vec_dropout: identity (eval mode)

    seq_tm = jnp.concatenate([sen_seq_tm, verb_seq_tm], axis=0)      # (S+Sv, B, 2H)
    t, bo, do = seq_tm.shape
    sen_out = linear(seq_tm.reshape(t * bo, do), params["so_w"], params["so_b"],
                     normalize=True).reshape(t, bo, -1)
    sen_out = jnp.transpose(sen_out, (1, 0, 2))                      # (B, S+Sv, 2H)
    # sen_out_dropout: identity (eval mode)

    sen_h = jnp.concatenate([sen_h_n, verb_h_n], axis=2)             # (2, B, 2H)
    l, bh, dh = sen_h.shape
    sen_h = linear(sen_h.reshape(l * bh, dh), params["sh_w"], params["sh_b"],
                   normalize=True).reshape(l, bh, -1)
    # sen_h_dropout: identity (eval mode)

    return sen2vec, sen_out, sen_h


# ----------------------------------------------------------------------------
if __name__ == "__main__":
    B, H, E, C = 2, 32, 16, 32          # batch, hidden, embed dim, common_size
    S, SV = 8, 4                        # max_seq_len, max_verb_len
    VOCAB, PAD = 20, 0

    params = init_params(jax.random.PRNGKey(0), VOCAB, E, H, C)

    batch_sentence = jnp.array([[3, 5, 7, 2, 9, 4, 0, 0],
                                [6, 1, 8, 3, 2, 7, 5, 9]], dtype=jnp.int32)
    batch_verb = jnp.array([[4, 9, 0, 0],
                            [2, 6, 3, 0]], dtype=jnp.int32)

    sen2vec, sen_out, sen_h = gru_module_forward(
        params, batch_sentence, batch_verb, PAD, H)

    jax.block_until_ready((sen2vec, sen_out, sen_h))

    assert sen2vec.shape == (B, C)
    assert sen_out.shape == (B, S + SV, 2 * H)
    assert sen_h.shape == (2, B, H)
    assert bool(jnp.all(jnp.isfinite(sen2vec)))
    assert bool(jnp.all(jnp.isfinite(sen_out)))
    assert bool(jnp.all(jnp.isfinite(sen_h)))

    print("KERNEL_OK")
</pallas_src>

<mosaic_0001>
module attributes {stable_mosaic.version = 11 : i64} {
  func.func @proj_kernel(%arg0: i32, %arg1: memref<64x16xf32, #tpu.memory_space<vmem>>, %arg2: memref<16x768xbf16, #tpu.memory_space<vmem>>, %arg3: memref<1x768xf32, #tpu.memory_space<vmem>>, %arg4: memref<64x768xbf16, #tpu.memory_space<vmem>>) attributes {dimension_semantics = [#tpu.dimension_semantics<parallel>], iteration_bounds = array<i64: 1>, scalar_prefetch = 0 : i64, scratch_operands = 0 : i64, tpu.core_type = #tpu.core_type<tc>, window_params = [{transform_indices = @transform_0, window_bounds = array<i64: 64, 16>}, {pipeline_mode = #tpu.pipeline_mode<synchronous>, transform_indices = @transform_1, window_bounds = array<i64: 16, 768>}, {pipeline_mode = #tpu.pipeline_mode<synchronous>, transform_indices = @transform_2, window_bounds = array<i64: 1, 768>}, {transform_indices = @transform_3, window_bounds = array<i64: 64, 768>}]} {
    %c0 = arith.constant 0 : index
    %c0_0 = arith.constant 0 : index
    %0 = vector.load %arg1[%c0, %c0_0] : memref<64x16xf32, #tpu.memory_space<vmem>>, vector<64x16xf32>
    %1 = arith.truncf %0 : vector<64x16xf32> to vector<64x16xbf16>
    %c0_1 = arith.constant 0 : index
    %c0_2 = arith.constant 0 : index
    %2 = vector.load %arg2[%c0_1, %c0_2] : memref<16x768xbf16, #tpu.memory_space<vmem>>, vector<16x768xbf16>
    %cst = arith.constant dense<0.000000e+00> : vector<64x768xf32>
    %3 = tpu.matmul %1, %2, %cst {dimension_numbers = #tpu.dot_dimension_numbers<[1], [0], [0], [1], [0, 0, 1, 1], [], []>} : vector<64x16xbf16>, vector<16x768xbf16>, vector<64x768xf32> -> vector<64x768xf32>
    %c0_3 = arith.constant 0 : index
    %c0_4 = arith.constant 0 : index
    %4 = vector.load %arg3[%c0_3, %c0_4] : memref<1x768xf32, #tpu.memory_space<vmem>>, vector<1x768xf32>
    %5 = vector.broadcast %4 : vector<1x768xf32> to vector<64x768xf32>
    %6 = arith.addf %3, %5 : vector<64x768xf32>
    %7 = arith.truncf %6 : vector<64x768xf32> to vector<64x768xbf16>
    %c0_5 = arith.constant 0 : index
    %c0_6 = arith.constant 0 : index
    %8 = vector.load %arg4[%c0_5, %c0_6] : memref<64x768xbf16, #tpu.memory_space<vmem>>, vector<64x768xbf16>
    tpu.vector_store %arg4[%c0_5, %c0_6], %7 {strides = array<i32>} : memref<64x768xbf16, #tpu.memory_space<vmem>>, vector<64x768xbf16>,
    return
  }
  func.func @transform_0(%arg0: i32) -> (i32, i32) {
    %c0_i32 = arith.constant 0 : i32
    %c0_i32_0 = arith.constant 0 : i32
    return %arg0, %c0_i32 : i32, i32
  }
  func.func @transform_1(%arg0: i32) -> (i32, i32) {
    %c0_i32 = arith.constant 0 : i32
    %c0_i32_0 = arith.constant 0 : i32
    %c0_i32_1 = arith.constant 0 : i32
    return %c0_i32, %c0_i32_0 : i32, i32
  }
  func.func @transform_2(%arg0: i32) -> (i32, i32) {
    %c0_i32 = arith.constant 0 : i32
    %c0_i32_0 = arith.constant 0 : i32
    %c0_i32_1 = arith.constant 0 : i32
    return %c0_i32, %c0_i32_0 : i32, i32
  }
  func.func @transform_3(%arg0: i32) -> (i32, i32) {
    %c0_i32 = arith.constant 0 : i32
    %c0_i32_0 = arith.constant 0 : i32
    return %arg0, %c0_i32 : i32, i32
  }
}

</mosaic_0001>

<bundles_post_ra>
// kernel: tpu_custom_call.1
= control target key start
LH: loop header
LB: loop body
LE: loop exit
PB: predicated region body
PF: predicated region fallthrough
CT: control target
= control target key end

     0   :  { %v615_v2 = vmov 0   ;;  %vm96_vm0 = vcmask 130048   ;;  %s739_s0 = inlined_call_operand.vmem [shape: f32[64,16], index: 0, kind: input, shape index: {}]   ;;  %s740_s1 = inlined_call_operand.vmem [shape: bf16[16,768], index: 1, kind: input, shape index: {}]   ;;  %s741_s2 = inlined_call_operand.vmem [shape: f32[1,768], index: 2, kind: input, shape index: {}]   ;;  %s742_s3 = inlined_call_operand.hbm [shape: bf16[64,768], index: 3, kind: output, shape index: {}]  }
   0x1   :  { %v584_v0 = vld [vmem:[%s740_s1 + $0x4] ss:$24 sps:$4 sm:$0xff]   ;;  %v586_v1 = vld [vmem:[%s740_s1] ss:$24 sps:$4 sm:$0xff]   ;;  %141 = vmatprep.mubr.bf16.mxu0 %v615_v2  ;;  %161 = vmatprep.mubr.bf16.mxu1 %v615_v2  ;;  %v17_v4 = vld [vmem:[%s739_s0 + $0x8] sm:$0xff] }
   0x2   :  { %v16_v3 = vld [vmem:[%s739_s0] sm:$0xff]  ;;  %123 = vmatprep.subr.bf16.mxu0 %v584_v0  ;;  %578 = vmatprep.subr.bf16.mxu1 %v584_v0  ;;  %v21_v7 = vld [vmem:[%s739_s0 + $0x28] sm:$0xff]  ;;  %v18_v13 = vld [vmem:[%s739_s0 + $0x10] sm:$0xff] }
   0x3   :  { %v24_v5 = vpack.c.bf16 %v17_v4, %v16_v3  ;;  %v20_v6 = vld [vmem:[%s739_s0 + $0x20] sm:$0xff]  ;;  %124 = vmatpush1.bf16.msra.mxu0 %v586_v1  ;;  %579 = vmatpush1.bf16.msra.mxu1 %v586_v1  ;;  %v590_v11 = vld [vmem:[%s740_s1 + $0x10] ss:$24 sps:$4 sm:$0xff]   ;;  %v592_v12 = vld [vmem:[%s740_s1 + $0x14] ss:$24 sps:$4 sm:$0xff]  }
   0x4   :  { %v26_v8 = vpack.c.bf16 %v21_v7, %v20_v6  ;;  %v587_v9 = vld [vmem:[%s740_s1 + $0x8] ss:$24 sps:$4 sm:$0xff]   ;;  %v589_v10 = vld [vmem:[%s740_s1 + $0xc] ss:$24 sps:$4 sm:$0xff]   ;;  %v19_v14 = vld [vmem:[%s739_s0 + $0x18] sm:$0xff]  ;;  %269 = vmatprep.subr.bf16.mxu0 %v592_v12 }
   0x5   :  { %196 = vmatprep.subr.bf16.mxu1 %v589_v10  ;;  %v22_v15 = vld [vmem:[%s739_s0 + $0x30] sm:$0xff]  ;;  %v23_v16 = vld [vmem:[%s739_s0 + $0x38] sm:$0xff] }
   0x6   :  { %518 = vmatmul.mubr.msk.bf16.vlgmr.msra.gmra.mxu0 %vm96_vm0, %v24_v5  ;;  %520 = vmatmul.mubr.msk.bf16.vlgmr.msra.gmra.mxu1 %vm96_vm0, %v26_v8 }
   0x7   :  { %197 = vmatpush1.bf16.msra.mxu1 %v587_v9 }
   0x8   :  { %8 = vsyncpa [#allocation3], 0  ;;  %270 = vmatpush1.bf16.msra.mxu0 %v590_v11  ;;  %151 = vmatprep.mubr.bf16.mxu0 %v615_v2  ;;  %v25_v17 = vpack.c.bf16 %v19_v14, %v18_v13  ;;  %v27_v18 = vpack.c.bf16 %v23_v16, %v22_v15  ;;  %v36_v19 = vlaneseq  ;;  %v34_v23 = vld [vmem:[%s741_s2] sm:$0x3f]  ;;  %s616_s2 = smov [#allocation2]  }
   0x9   :  { %171 = vmatprep.mubr.bf16.mxu1 %v615_v2  ;;  %s501_s13 = sshll.u32 %s616_s2, 4  ;;  %s502_s13 = int_to_ptr.vmem [resolvable:$true] %s501_s13 }
   0xa   :  { %v37_v20 = vshrl.u32 %v36_v19, 7  ;;  %s593_s14 = scalar_lea.vmem %s502_s13, 3072  ;;  %p598_p1 = scmp.lt.s32.totalorder %s502_s13, %s502_s13 }
   0xb   :  { %p594_p0 = scmp.ne.s32.totalorder %s502_s13, %s593_s14  ;;  %p599_p2 = scmp.lt.s32.totalorder %s593_s14, %s593_s14 }
   0xc   :  { %v38_v21 = vsub.s32 0, %v37_v20  ;;  %v42_v22 = vsub.s32 1, %v37_v20  ;;  %v46_v50 = vsub.s32 2, %v37_v20  ;;  %v54_v51 = vsub.s32 4, %v37_v20 }
   0xd   :  { %v50_v52 = vsub.s32 3, %v37_v20  ;;  %v58_v53 = vsub.s32 5, %v37_v20  ;;  %p600_p3 = por %p599_p2, %p598_p1 }
   0xe   :  { %519 = vmatmul.mubr.msk.bf16.gmra.mxu0 %vm96_vm0, %v25_v17  ;;  %521 = vmatmul.mubr.msk.bf16.gmra.mxu1 %vm96_vm0, %v27_v18  ;;  %v39_v24 = vrot.slane %v34_v23, %v38_v21  ;;  %v43_v25 = vrot.slane %v34_v23, %v42_v22  ;;  %v696_v0 = vrot.slane %v34_v23, %v46_v50 }
   0xf   :  { %214 = vmatprep.mubr.bf16.mxu1 %v615_v2  ;;  %287 = vmatprep.mubr.bf16.mxu0 %v615_v2  ;;  %v698_v1 = vrot.slane %v34_v23, %v54_v51  ;;  %v702_v3 = vrot.slane %v34_v23, %v58_v53  ;;  %p601_p4 = pnand %p600_p3, %p594_p0 }
  0x16   :  { %522 = vmatmul.mubr.msk.bf16.vlgmr.msra.gmra.mxu1 %vm96_vm0, %v24_v5  ;;  %526 = vmatmul.mubr.msk.bf16.vlgmr.msra.gmra.mxu0 %vm96_vm0, %v24_v5 }
  0x17   :  { %224 = vmatprep.mubr.bf16.mxu1 %v615_v2  ;;  %297 = vmatprep.mubr.bf16.mxu0 %v615_v2 }
  0x1e   :  { %523 = vmatmul.mubr.msk.bf16.gmra.mxu1 %vm96_vm0, %v25_v17  ;;  %527 = vmatmul.mubr.msk.bf16.gmra.mxu0 %vm96_vm0, %v25_v17 }
  0x1f   :  { %234 = vmatprep.mubr.bf16.mxu1 %v615_v2  ;;  %307 = vmatprep.mubr.bf16.mxu0 %v615_v2 }
  0x26   :  { %524 = vmatmul.mubr.msk.bf16.gmra.mxu1 %vm96_vm0, %v26_v8  ;;  %528 = vmatmul.mubr.msk.bf16.gmra.mxu0 %vm96_vm0, %v26_v8 }
  0x27   :  { %244 = vmatprep.mubr.bf16.mxu1 %v615_v2  ;;  %317 = vmatprep.mubr.bf16.mxu0 %v615_v2  ;;  %v700_v2 = vrot.slane %v34_v23, %v50_v52 }
  0x2e   :  { %525 = vmatmul.mubr.msk.bf16.gmra.mxu1 %vm96_vm0, %v27_v18  ;;  %529 = vmatmul.mubr.msk.bf16.gmra.mxu0 %vm96_vm0, %v27_v18 }
  0xc6   :  { %v143_v26 = vpop.f32.mrf.mxu0  ;;  %v163_v27 = vpop.f32.mrf.mxu1 }
  0xc7   :  { %v144_v30 = vadd.f32 %v143_v26, %v39_v24  ;;  %v164_v31 = vadd.f32 %v163_v27, %v39_v24 }
  0xc8   :  { %v145_v28 = vpop.f32.mrf.mxu0  ;;  %v165_v29 = vpop.f32.mrf.mxu1 }
  0xc9   :  { %v146_v32 = vadd.f32 %v145_v28, %v43_v25  ;;  %v166_v33 = vadd.f32 %v165_v29, %v43_v25 }
  0xca   :  { %v147_v34 = vpop.f32.mrf.mxu0  ;;  %v167_v35 = vpop.f32.mrf.mxu1 }
  0xcb   :  { %v554_v36 = vpack.c.bf16 %v146_v32, %v144_v30  ;;  %v566_v37 = vpack.c.bf16 %v166_v33, %v164_v31  ;;  %v148_v40 = vadd.f32 %v147_v34, %v39_v24  ;;  %v168_v41 = vadd.f32 %v167_v35, %v39_v24 }
  0xcc   :  { %v149_v38 = vpop.f32.mrf.mxu0  ;;  %v169_v39 = vpop.f32.mrf.mxu1 }
  0xcd   :  { %472 = vst [vmem:[#allocation2] sm:$0xff] %v554_v36  ;;  %484 = vst [vmem:[#allocation2 + $0x60] sm:$0xff] %v566_v37  ;;  %v150_v42 = vadd.f32 %v149_v38, %v43_v25  ;;  %v170_v43 = vadd.f32 %v169_v39, %v43_v25 }
  0xce   :  { %v153_v44 = vpop.f32.mrf.mxu0  ;;  %v173_v45 = vpop.f32.mrf.mxu1 }
  0xcf   :  { %v557_v46 = vpack.c.bf16 %v150_v42, %v148_v40  ;;  %v569_v47 = vpack.c.bf16 %v170_v43, %v168_v41  ;;  %v154_v54 = vadd.f32 %v153_v44, %v39_v24  ;;  %v174_v55 = vadd.f32 %v173_v45, %v39_v24 }
  0xd0   :  { %v155_v48 = vpop.f32.mrf.mxu0  ;;  %v175_v49 = vpop.f32.mrf.mxu1 }
  0xd1   :  { %475 = vst [vmem:[#allocation2 + $0x18] sm:$0xff] %v557_v46  ;;  %487 = vst [vmem:[#allocation2 + $0x78] sm:$0xff] %v569_v47  ;;  %v156_v56 = vadd.f32 %v155_v48, %v43_v25  ;;  %v176_v57 = vadd.f32 %v175_v49, %v43_v25 }
  0xd2   :  { %v157_v58 = vpop.f32.mrf.mxu0  ;;  %v177_v59 = vpop.f32.mrf.mxu1 }
  0xd3   :  { %v560_v60 = vpack.c.bf16 %v156_v56, %v154_v54  ;;  %v572_v61 = vpack.c.bf16 %v176_v57, %v174_v55  ;;  %v158_v4 = vadd.f32 %v157_v58, %v39_v24  ;;  %v178_v5 = vadd.f32 %v177_v59, %v39_v24 }
  0xd4   :  { %v159_v62 = vpop.f32.mrf.mxu0  ;;  %v179_v63 = vpop.f32.mrf.mxu1 }
  0xd5   :  { %478 = vst [vmem:[#allocation2 + $0x30] sm:$0xff] %v560_v60  ;;  %490 = vst [vmem:[#allocation2 + $0x90] sm:$0xff] %v572_v61  ;;  %v160_v6 = vadd.f32 %v159_v62, %v43_v25  ;;  %v180_v7 = vadd.f32 %v179_v63, %v43_v25 }
  0xd6   :  { %v216_v8 = vpop.f32.mrf.mxu1  ;;  %v289_v9 = vpop.f32.mrf.mxu0 }
  0xd7   :  { %v563_v10 = vpack.c.bf16 %v160_v6, %v158_v4  ;;  %v575_v11 = vpack.c.bf16 %v180_v7, %v178_v5  ;;  %v217_v14 = vadd.f32 %v216_v8, %v696_v0  ;;  %v290_v15 = vadd.f32 %v289_v9, %v698_v1 }
  0xd8   :  { %v218_v12 = vpop.f32.mrf.mxu1  ;;  %v291_v13 = vpop.f32.mrf.mxu0 }
  0xd9   :  { %481 = vst [vmem:[#allocation2 + $0x48] sm:$0xff] %v563_v10  ;;  %493 = vst [vmem:[#allocation2 + $0xa8] sm:$0xff] %v575_v11  ;;  %v219_v16 = vadd.f32 %v218_v12, %v700_v2  ;;  %v292_v17 = vadd.f32 %v291_v13, %v702_v3 }
  0xda   :  { %v220_v18 = vpop.f32.mrf.mxu1  ;;  %v293_v19 = vpop.f32.mrf.mxu0 }
  0xdb   :  { %v555_v20 = vpack.c.bf16 %v219_v16, %v217_v14  ;;  %v556_v21 = vpack.c.bf16 %v292_v17, %v290_v15  ;;  %v221_v24 = vadd.f32 %v220_v18, %v696_v0  ;;  %v294_v25 = vadd.f32 %v293_v19, %v698_v1 }
  0xdc   :  { %v222_v22 = vpop.f32.mrf.mxu1  ;;  %v295_v23 = vpop.f32.mrf.mxu0 }
  0xdd   :  { %473 = vst [vmem:[#allocation2 + $0x8] sm:$0xff] %v555_v20  ;;  %474 = vst [vmem:[#allocation2 + $0x10] sm:$0xff] %v556_v21  ;;  %v223_v26 = vadd.f32 %v222_v22, %v700_v2  ;;  %v296_v27 = vadd.f32 %v295_v23, %v702_v3 }
  0xde   :  { %v226_v28 = vpop.f32.mrf.mxu1  ;;  %v299_v29 = vpop.f32.mrf.mxu0 }
  0xdf   :  { %v558_v30 = vpack.c.bf16 %v223_v26, %v221_v24  ;;  %v559_v31 = vpack.c.bf16 %v296_v27, %v294_v25  ;;  %v227_v34 = vadd.f32 %v226_v28, %v696_v0  ;;  %v300_v35 = vadd.f32 %v299_v29, %v698_v1 }
  0xe0   :  { %v228_v32 = vpop.f32.mrf.mxu1  ;;  %v301_v33 = vpop.f32.mrf.mxu0 }
  0xe1   :  { %476 = vst [vmem:[#allocation2 + $0x20] sm:$0xff] %v558_v30  ;;  %477 = vst [vmem:[#allocation2 + $0x28] sm:$0xff] %v559_v31  ;;  %v229_v36 = vadd.f32 %v228_v32, %v700_v2  ;;  %v302_v37 = vadd.f32 %v301_v33, %v702_v3 }
  0xe2   :  { %v230_v38 = vpop.f32.mrf.mxu1  ;;  %v303_v39 = vpop.f32.mrf.mxu0 }
  0xe3   :  { %v561_v40 = vpack.c.bf16 %v229_v36, %v227_v34  ;;  %v562_v41 = vpack.c.bf16 %v302_v37, %v300_v35  ;;  %v231_v44 = vadd.f32 %v230_v38, %v696_v0  ;;  %v304_v45 = vadd.f32 %v303_v39, %v698_v1 }
  0xe4   :  { %v232_v42 = vpop.f32.mrf.mxu1  ;;  %v305_v43 = vpop.f32.mrf.mxu0 }
  0xe5   :  { %479 = vst [vmem:[#allocation2 + $0x38] sm:$0xff] %v561_v40  ;;  %480 = vst [vmem:[#allocation2 + $0x40] sm:$0xff] %v562_v41  ;;  %v233_v46 = vadd.f32 %v232_v42, %v700_v2  ;;  %v306_v47 = vadd.f32 %v305_v43, %v702_v3 }
  0xe6   :  { %v236_v48 = vpop.f32.mrf.mxu1  ;;  %v309_v49 = vpop.f32.mrf.mxu0 }
  0xe7   :  { %v564_v50 = vpack.c.bf16 %v233_v46, %v231_v44  ;;  %v565_v51 = vpack.c.bf16 %v306_v47, %v304_v45  ;;  %v237_v54 = vadd.f32 %v236_v48, %v696_v0  ;;  %v310_v55 = vadd.f32 %v309_v49, %v698_v1 }
  0xe8   :  { %v238_v52 = vpop.f32.mrf.mxu1  ;;  %v311_v53 = vpop.f32.mrf.mxu0 }
  0xe9   :  { %482 = vst [vmem:[#allocation2 + $0x50] sm:$0xff] %v564_v50  ;;  %483 = vst [vmem:[#allocation2 + $0x58] sm:$0xff] %v565_v51  ;;  %v239_v56 = vadd.f32 %v238_v52, %v700_v2  ;;  %v312_v57 = vadd.f32 %v311_v53, %v702_v3 }
  0xea   :  { %v240_v58 = vpop.f32.mrf.mxu1  ;;  %v313_v59 = vpop.f32.mrf.mxu0 }
  0xeb   :  { %v567_v60 = vpack.c.bf16 %v239_v56, %v237_v54  ;;  %v568_v61 = vpack.c.bf16 %v312_v57, %v310_v55  ;;  %v241_v4 = vadd.f32 %v240_v58, %v696_v0  ;;  %v314_v5 = vadd.f32 %v313_v59, %v698_v1 }
  0xec   :  { %v242_v62 = vpop.f32.mrf.mxu1  ;;  %v315_v63 = vpop.f32.mrf.mxu0 }
  0xed   :  { %485 = vst [vmem:[#allocation2 + $0x68] sm:$0xff] %v567_v60  ;;  %486 = vst [vmem:[#allocation2 + $0x70] sm:$0xff] %v568_v61  ;;  %v243_v6 = vadd.f32 %v242_v62, %v700_v2  ;;  %v316_v7 = vadd.f32 %v315_v63, %v702_v3 }
  0xee   :  { %v246_v8 = vpop.f32.mrf.mxu1  ;;  %v319_v9 = vpop.f32.mrf.mxu0 }
  0xef   :  { %v570_v10 = vpack.c.bf16 %v243_v6, %v241_v4  ;;  %v571_v11 = vpack.c.bf16 %v316_v7, %v314_v5  ;;  %v247_v14 = vadd.f32 %v246_v8, %v696_v0  ;;  %v320_v15 = vadd.f32 %v319_v9, %v698_v1 }
  0xf0   :  { %v248_v12 = vpop.f32.mrf.mxu1  ;;  %v321_v13 = vpop.f32.mrf.mxu0 }
  0xf1   :  { %488 = vst [vmem:[#allocation2 + $0x80] sm:$0xff] %v570_v10  ;;  %489 = vst [vmem:[#allocation2 + $0x88] sm:$0xff] %v571_v11  ;;  %v249_v16 = vadd.f32 %v248_v12, %v700_v2  ;;  %v322_v17 = vadd.f32 %v321_v13, %v702_v3 }
  0xf2   :  { %v250_v18 = vpop.f32.mrf.mxu1  ;;  %v323_v19 = vpop.f32.mrf.mxu0 }
  0xf3   :  { %v573_v20 = vpack.c.bf16 %v249_v16, %v247_v14  ;;  %v574_v21 = vpack.c.bf16 %v322_v17, %v320_v15  ;;  %v251_v24 = vadd.f32 %v250_v18, %v696_v0  ;;  %v324_v25 = vadd.f32 %v323_v19, %v698_v1 }
  0xf4   :  { %v252_v22 = vpop.f32.mrf.mxu1  ;;  %v325_v23 = vpop.f32.mrf.mxu0 }
  0xf5   :  { %491 = vst [vmem:[#allocation2 + $0x98] sm:$0xff] %v573_v20  ;;  %492 = vst [vmem:[#allocation2 + $0xa0] sm:$0xff] %v574_v21  ;;  %v253_v26 = vadd.f32 %v252_v22, %v700_v2  ;;  %v326_v27 = vadd.f32 %v325_v23, %v702_v3 }
  0xf7   :  { %v576_v28 = vpack.c.bf16 %v253_v26, %v251_v24  ;;  %v577_v29 = vpack.c.bf16 %v326_v27, %v324_v25 }
  0xf9   :  { %494 = vst [vmem:[#allocation2 + $0xb0] sm:$0xff] %v576_v28  ;;  %495 = vst [vmem:[#allocation2 + $0xb8] sm:$0xff] %v577_v29 }
  0xfa   :  { %604 = shalt.err (!%p601_p4)
}
  0xfb   :  { %s617_s15 = smov 384   ;;  %s618_s16 = smov 24  }
  0xfc   :  { %507 = dma.vmem_to_hbm [thread:$0]  %s502_s13, 3072, %s742_s3, [#allocation3], %s617_s15, %s617_s15, %s618_s16  }
  0xfd   :  { %613 = dma.done.wait [#allocation3], 3072  }
  0xfe   :  { %614 = vsyncadd [#allocation3], 4294964224 }
  0xff   :  { %511 = vsyncpa [#allocation3], 1 }

</bundles_post_ra>
